<compile_context>
chip_gen: v6e
topology: v6e:2x2x1
jax: 0.10.0
libtpu: 0.0.40
codegen_flags: <defaults>
</compile_context>

<pallas_src>
import functools

import jax
import jax.numpy as jnp
from jax.experimental import pallas as pl
from jax.experimental.pallas import tpu as pltpu


# ---------------------------------------------------------------------------
# Pallas kernel: fused 3-layer MLP critic  (obs tile -> value tile)
# ---------------------------------------------------------------------------
def _ppo_critic_kernel(obs_ref, w1_ref, b1_ref, w2_ref, b2_ref, w3_ref, b3_ref,
                       v_ref):
    x = obs_ref[...]                                                   # (TB, D)
    h = jnp.tanh(
        jnp.dot(x, w1_ref[...], preferred_element_type=jnp.float32)
        + b1_ref[...])                                                 # (TB, H)
    h = jnp.tanh(
        jnp.dot(h, w2_ref[...], preferred_element_type=jnp.float32)
        + b2_ref[...])                                                 # (TB, H)
    v = (jnp.dot(h, w3_ref[...], preferred_element_type=jnp.float32)
         + b3_ref[...])                                                # (TB, 1)
    v_ref[...] = v.astype(v_ref.dtype)


def _round_up(x, m):
    return ((x + m - 1) // m) * m


def ppo_critic_forward(obs, params, *, block_rows=256):
    """obs: (B, obs_dim) f32 -> value (B, 1) f32.

    Weights are stored transposed relative to PyTorch: w* is (in, out),
    b* is (1, out).
    """
    B, D = obs.shape
    H = params["w1"].shape[1]

    # Row-tile size: multiple of 8 (sublane), capped at block_rows.
    TB = min(block_rows, _round_up(B, 8))
    Bp = _round_up(B, TB)
    if Bp != B:
        obs = jnp.pad(obs, ((0, Bp - B), (0, 0)))

    const = lambda shp: pl.BlockSpec(shp, lambda i: (0,) * len(shp))

    out = pl.pallas_call(
        _ppo_critic_kernel,
        out_shape=jax.ShapeDtypeStruct((Bp, 1), jnp.float32),
        grid=(pl.cdiv(Bp, TB),),
        in_specs=[
            pl.BlockSpec((TB, D), lambda i: (i, 0)),   # obs row tile
            const((D, H)), const((1, H)),              # layer 1
            const((H, H)), const((1, H)),              # layer 2
            const((H, 1)), const((1, 1)),              # layer 3 (value head)
        ],
        out_specs=pl.BlockSpec((TB, 1), lambda i: (i, 0)),
        compiler_params=pltpu.CompilerParams(
            dimension_semantics=("parallel",)),
    )(obs, params["w1"], params["b1"], params["w2"], params["b2"],
      params["w3"], params["b3"])

    return out[:B]


# ---------------------------------------------------------------------------
# Parameter construction (deterministic)
# ---------------------------------------------------------------------------
def make_params(key, obs_dim, hidden_dim):
    ks = jax.random.split(key, 6)
    s = 0.1
    return {
        "w1": jax.random.normal(ks[0], (obs_dim, hidden_dim), jnp.float32) * s,
        "b1": jax.random.normal(ks[1], (1, hidden_dim), jnp.float32) * s,
        "w2": jax.random.normal(ks[2], (hidden_dim, hidden_dim), jnp.float32) * s,
        "b2": jax.random.normal(ks[3], (1, hidden_dim), jnp.float32) * s,
        "w3": jax.random.normal(ks[4], (hidden_dim, 1), jnp.float32) * s,
        "b3": jax.random.normal(ks[5], (1, 1), jnp.float32) * s,
    }


# Pure-JAX reference (mirrors the PyTorch forward) for a correctness check.
def _reference_forward(obs, p):
    h = jnp.tanh(obs @ p["w1"] + p["b1"])
    h = jnp.tanh(h @ p["w2"] + p["b2"])
    return h @ p["w3"] + p["b3"]


if __name__ == "__main__":
    obs_dim = 24          # obs_shape = (24,)
    hidden_dim = 64
    batch = 2

    key = jax.random.PRNGKey(0)
    k_obs, k_params, k_obs2 = jax.random.split(key, 3)
    params = make_params(k_params, obs_dim, hidden_dim)

    fwd = jax.jit(ppo_critic_forward)

    # Small batch (pads 2 -> 8 rows, single grid step).
    obs = jax.random.normal(k_obs, (batch, obs_dim), jnp.float32)
    v = jax.block_until_ready(fwd(obs, params))
    assert v.shape == (batch, 1), v.shape
    v_ref = _reference_forward(obs, params)
    assert jnp.allclose(v, v_ref, atol=1e-4, rtol=1e-4), "mismatch vs reference"

    # Larger batch to exercise the row-tiled, multi-step 'parallel' grid.
    obs2 = jax.random.normal(k_obs2, (300, obs_dim), jnp.float32)
    v2 = jax.block_until_ready(fwd(obs2, params))
    assert v2.shape == (300, 1), v2.shape
    v2_ref = _reference_forward(obs2, params)
    assert jnp.allclose(v2, v2_ref, atol=1e-4, rtol=1e-4), "mismatch (tiled)"

    print("KERNEL_OK")
</pallas_src>

<mosaic_0001>
module attributes {stable_mosaic.version = 11 : i64} {
  func.func @_ppo_critic_kernel(%arg0: i32, %arg1: memref<8x24xf32, #tpu.memory_space<vmem>>, %arg2: memref<24x64xf32, #tpu.memory_space<vmem>>, %arg3: memref<1x64xf32, #tpu.memory_space<vmem>>, %arg4: memref<64x64xf32, #tpu.memory_space<vmem>>, %arg5: memref<1x64xf32, #tpu.memory_space<vmem>>, %arg6: memref<64x1xf32, #tpu.memory_space<vmem>>, %arg7: memref<1x1xf32, #tpu.memory_space<vmem>>, %arg8: memref<8x1xf32, #tpu.memory_space<vmem>>) attributes {dimension_semantics = [#tpu.dimension_semantics<parallel>], iteration_bounds = array<i64: 1>, scalar_prefetch = 0 : i64, scratch_operands = 0 : i64, tpu.core_type = #tpu.core_type<tc>, window_params = [{transform_indices = @transform_0, window_bounds = array<i64: 8, 24>}, {pipeline_mode = #tpu.pipeline_mode<synchronous>, transform_indices = @transform_1, window_bounds = array<i64: 24, 64>}, {pipeline_mode = #tpu.pipeline_mode<synchronous>, transform_indices = @transform_2, window_bounds = array<i64: 1, 64>}, {pipeline_mode = #tpu.pipeline_mode<synchronous>, transform_indices = @transform_3, window_bounds = array<i64: 64, 64>}, {pipeline_mode = #tpu.pipeline_mode<synchronous>, transform_indices = @transform_4, window_bounds = array<i64: 1, 64>}, {pipeline_mode = #tpu.pipeline_mode<synchronous>, transform_indices = @transform_5, window_bounds = array<i64: 64, 1>}, {pipeline_mode = #tpu.pipeline_mode<synchronous>, transform_indices = @transform_6, window_bounds = array<i64: 1, 1>}, {transform_indices = @transform_7, window_bounds = array<i64: 8, 1>}]} {
    %c0 = arith.constant 0 : index
    %c0_0 = arith.constant 0 : index
    %0 = vector.load %arg1[%c0, %c0_0] : memref<8x24xf32, #tpu.memory_space<vmem>>, vector<8x24xf32>
    %c0_1 = arith.constant 0 : index
    %c0_2 = arith.constant 0 : index
    %1 = vector.load %arg2[%c0_1, %c0_2] : memref<24x64xf32, #tpu.memory_space<vmem>>, vector<24x64xf32>
    %cst = arith.constant dense<0.000000e+00> : vector<8x64xf32>
    %2 = tpu.matmul %0, %1, %cst {dimension_numbers = #tpu.dot_dimension_numbers<[1], [0], [0], [1], [0, 0, 1, 1], [], []>} : vector<8x24xf32>, vector<24x64xf32>, vector<8x64xf32> -> vector<8x64xf32>
    %c0_3 = arith.constant 0 : index
    %c0_4 = arith.constant 0 : index
    %3 = vector.load %arg3[%c0_3, %c0_4] : memref<1x64xf32, #tpu.memory_space<vmem>>, vector<1x64xf32>
    %4 = vector.broadcast %3 : vector<1x64xf32> to vector<8x64xf32>
    %5 = arith.addf %2, %4 : vector<8x64xf32>
    %6 = math.tanh %5 : vector<8x64xf32>
    %c0_5 = arith.constant 0 : index
    %c0_6 = arith.constant 0 : index
    %7 = vector.load %arg4[%c0_5, %c0_6] : memref<64x64xf32, #tpu.memory_space<vmem>>, vector<64x64xf32>
    %cst_7 = arith.constant dense<0.000000e+00> : vector<8x64xf32>
    %8 = tpu.matmul %6, %7, %cst_7 {dimension_numbers = #tpu.dot_dimension_numbers<[1], [0], [0], [1], [0, 0, 1, 1], [], []>} : vector<8x64xf32>, vector<64x64xf32>, vector<8x64xf32> -> vector<8x64xf32>
    %c0_8 = arith.constant 0 : index
    %c0_9 = arith.constant 0 : index
    %9 = vector.load %arg5[%c0_8, %c0_9] : memref<1x64xf32, #tpu.memory_space<vmem>>, vector<1x64xf32>
    %10 = vector.broadcast %9 : vector<1x64xf32> to vector<8x64xf32>
    %11 = arith.addf %8, %10 : vector<8x64xf32>
    %12 = math.tanh %11 : vector<8x64xf32>
    %c0_10 = arith.constant 0 : index
    %c0_11 = arith.constant 0 : index
    %13 = vector.load %arg6[%c0_10, %c0_11] : memref<64x1xf32, #tpu.memory_space<vmem>>, vector<64x1xf32>
    %cst_12 = arith.constant dense<0.000000e+00> : vector<8x1xf32>
    %14 = tpu.matmul %12, %13, %cst_12 {dimension_numbers = #tpu.dot_dimension_numbers<[1], [0], [0], [1], [0, 0, 1, 1], [], []>} : vector<8x64xf32>, vector<64x1xf32>, vector<8x1xf32> -> vector<8x1xf32>
    %c0_13 = arith.constant 0 : index
    %c0_14 = arith.constant 0 : index
    %15 = vector.load %arg7[%c0_13, %c0_14] : memref<1x1xf32, #tpu.memory_space<vmem>>, vector<1x1xf32>
    %16 = vector.broadcast %15 : vector<1x1xf32> to vector<8x1xf32>
    %17 = arith.addf %14, %16 : vector<8x1xf32>
    %c0_15 = arith.constant 0 : index
    %c0_16 = arith.constant 0 : index
    %18 = vector.load %arg8[%c0_15, %c0_16] : memref<8x1xf32, #tpu.memory_space<vmem>>, vector<8x1xf32>
    tpu.vector_store %arg8[%c0_15, %c0_16], %17 {strides = array<i32>} : memref<8x1xf32, #tpu.memory_space<vmem>>, vector<8x1xf32>,
    return
  }
  func.func @transform_0(%arg0: i32) -> (i32, i32) {
    %c0_i32 = arith.constant 0 : i32
    %c0_i32_0 = arith.constant 0 : i32
    return %arg0, %c0_i32 : i32, i32
  }
  func.func @transform_1(%arg0: i32) -> (i32, i32) {
    %c0_i32 = arith.constant 0 : i32
    %c0_i32_0 = arith.constant 0 : i32
    %c0_i32_1 = arith.constant 0 : i32
    return %c0_i32, %c0_i32_0 : i32, i32
  }
  func.func @transform_2(%arg0: i32) -> (i32, i32) {
    %c0_i32 = arith.constant 0 : i32
    %c0_i32_0 = arith.constant 0 : i32
    %c0_i32_1 = arith.constant 0 : i32
    return %c0_i32, %c0_i32_0 : i32, i32
  }
  func.func @transform_3(%arg0: i32) -> (i32, i32) {
    %c0_i32 = arith.constant 0 : i32
    %c0_i32_0 = arith.constant 0 : i32
    %c0_i32_1 = arith.constant 0 : i32
    return %c0_i32, %c0_i32_0 : i32, i32
  }
  func.func @transform_4(%arg0: i32) -> (i32, i32) {
    %c0_i32 = arith.constant 0 : i32
    %c0_i32_0 = arith.constant 0 : i32
    %c0_i32_1 = arith.constant 0 : i32
    return %c0_i32, %c0_i32_0 : i32, i32
  }
  func.func @transform_5(%arg0: i32) -> (i32, i32) {
    %c0_i32 = arith.constant 0 : i32
    %c0_i32_0 = arith.constant 0 : i32
    %c0_i32_1 = arith.constant 0 : i32
    return %c0_i32, %c0_i32_0 : i32, i32
  }
  func.func @transform_6(%arg0: i32) -> (i32, i32) {
    %c0_i32 = arith.constant 0 : i32
    %c0_i32_0 = arith.constant 0 : i32
    %c0_i32_1 = arith.constant 0 : i32
    return %c0_i32, %c0_i32_0 : i32, i32
  }
  func.func @transform_7(%arg0: i32) -> (i32, i32) {
    %c0_i32 = arith.constant 0 : i32
    %c0_i32_0 = arith.constant 0 : i32
    return %arg0, %c0_i32 : i32, i32
  }
}

</mosaic_0001>

<bundles_post_ra>
// kernel: ppo_critic_forward.1
= control target key start
LH: loop header
LB: loop body
LE: loop exit
PB: predicated region body
PF: predicated region fallthrough
CT: control target
= control target key end

     0   :  { %s557_s0 = inlined_call_operand.vmem [shape: f32[8,24], index: 0, kind: input, shape index: {}]   ;;  %s558_s1 = inlined_call_operand.hbm [shape: f32[24,64], index: 1, kind: input, shape index: {}]   ;;  %s559_s2 = inlined_call_operand.vmem [shape: f32[1,64], index: 2, kind: input, shape index: {}]   ;;  %s560_s3 = inlined_call_operand.vmem [shape: f32[64,64], index: 3, kind: input, shape index: {}]   ;;  %s561_s4 = inlined_call_operand.vmem [shape: f32[1,64], index: 4, kind: input, shape index: {}]   ;;  %s562_s5 = inlined_call_operand.vmem [shape: f32[64,1], index: 5, kind: input, shape index: {}]   ;;  %s563_s6 = inlined_call_operand.<no memory space> [shape: f32[1,1], index: 6, kind: input, shape index: {}]   ;;  %s564_s7 = inlined_call_operand.vmem [shape: f32[8,1], index: 7, kind: output, shape index: {}]  }
   0x1   :  { %v12_v0 = vstv %s563_s6 }
   0x2   :  { %13 = vst [vmem:[#allocation2] sm:$0x1] %v12_v0 }
   0x3   :  { %14 = vsyncpa [#allocation4], 0  ;;  %s419_s26 = smov [#allocation3]  }
   0x4   :  { %s22_s27 = sshll.u32 %s419_s26, 4  ;;  %s23_s27 = int_to_ptr.vmem [resolvable:$true] %s22_s27 }
   0x5   :  { %s405_s28 = scalar_lea.vmem %s23_s27, 384  ;;  %p410_p1 = scmp.lt.s32.totalorder %s23_s27, %s23_s27 }
   0x6   :  { %p406_p0 = scmp.ne.s32.totalorder %s23_s27, %s405_s28  ;;  %p411_p2 = scmp.lt.s32.totalorder %s405_s28, %s405_s28 }
   0x8   :  { %p412_p3 = por %p411_p2, %p410_p1 }
   0xa   :  { %p413_p4 = pnand %p412_p3, %p406_p0 }
   0xc   :  { %416 = shalt.err (!%p413_p4)
}
   0xd   :  { %s420_s29 = smov 128   ;;  %s421_s30 = smov 8  }
   0xe   :  { %28 = dma.hbm_to_vmem [thread:$0]  %s558_s1, 384, %s23_s27, [#allocation4], %s420_s29, %s420_s29, %s421_s30  }
   0xf   :  { %417 = dma.done.wait [#allocation4], 384  }
  0x10   :  { %418 = vsyncadd [#allocation4], 4294966912  ;;  %v422_v1 = vmov 0.0   ;;  %vm423_vm0 = vmmov 0   ;;  %v45_v2 = vld [vmem:[#allocation3 + $0x10] sm:$0xff]  ;;  %v44_v3 = vld [vmem:[#allocation3 + $0x8] sm:$0xff] }
  0x11   :  { %341 = vmatprep.subr.mxu0 %v422_v1  ;;  %347 = vmatprep.mubr.msk.f32.mxu0 %vm423_vm0, %v422_v1  ;;  %v43_v4 = vld [vmem:[#allocation3] sm:$0xff]  ;;  %vm53_vm1 = vcmask 195584   ;;  %v135_v6 = vld [vmem:[%s560_s3 + $0x38] sm:$0xff]  ;;  %v134_v7 = vld [vmem:[%s560_s3 + $0x30] sm:$0xff]  ;;  %vm143_vm2 = vcmask 523264   ;;  %vm306_vm3 = vcmask 7168  }
  0x12   :  { %350 = vmatprep.subr.mxu1 %v422_v1  ;;  %366 = vmatprep.mubr.msk.f32.mxu1 %vm423_vm0, %v422_v1  ;;  %v42_v5 = vld [vmem:[%s557_s0] sm:$0xff]  ;;  %v133_v8 = vld [vmem:[%s560_s3 + $0x28] sm:$0xff]  ;;  %v131_v10 = vld [vmem:[%s560_s3 + $0x18] sm:$0xff] }
  0x13   :  { %342 = vmatpush3.msra.mxu0 %v45_v2  ;;  %351 = vmatpush3.msra.mxu1 %v135_v6  ;;  %v132_v9 = vld [vmem:[%s560_s3 + $0x20] sm:$0xff]  ;;  %v130_v11 = vld [vmem:[%s560_s3 + $0x10] sm:$0xff]  ;;  %v129_v12 = vld [vmem:[%s560_s3 + $0x8] sm:$0xff] }
  0x14   :  { %343 = vmatprep.subr.mxu0 %v422_v1  ;;  %352 = vmatprep.subr.mxu1 %v422_v1  ;;  %v128_v13 = vld [vmem:[%s560_s3] sm:$0xff]  ;;  %v225_v19 = vld [vmem:[%s562_s5 + $0x38] sm:$0xff]  ;;  %v224_v20 = vld [vmem:[%s562_s5 + $0x30] sm:$0xff] }
  0x15   :  { %344 = vmatpush3.msra.mxu0 %v44_v3  ;;  %353 = vmatpush3.msra.mxu1 %v134_v7  ;;  %v313_v14 = vld [vmem:[%s559_s2] ss:$0 sm:$0xff]  ;;  %v223_v21 = vld [vmem:[%s562_s5 + $0x28] sm:$0xff]  ;;  %v221_v23 = vld [vmem:[%s562_s5 + $0x18] sm:$0xff] }
  0x16   :  { %345 = vmatprep.subr.mxu0 %v422_v1  ;;  %354 = vmatprep.subr.mxu1 %v422_v1  ;;  %v222_v22 = vld [vmem:[%s562_s5 + $0x20] sm:$0xff]  ;;  %v220_v24 = vld [vmem:[%s562_s5 + $0x10] sm:$0xff]  ;;  %v219_v25 = vld [vmem:[%s562_s5 + $0x8] sm:$0xff] }
  0x17   :  { %346 = vmatpush3.msra.mxu0 %v43_v4  ;;  %355 = vmatpush3.msra.mxu1 %v133_v8  ;;  %v218_v26 = vld [vmem:[%s562_s5] sm:$0xff] }
  0x18   :  { %348 = vmatmul.mubr.msk.f32.vlgmr.msra.gmra.mxu0 %vm53_vm1, %v42_v5  ;;  %369 = vmatprep.subr.mxu0 %v422_v1  ;;  %v315_v27 = vld [vmem:[%s561_s4] ss:$0 sm:$0xff] }
  0x19   :  { %385 = vmatprep.mubr.msk.f32.mxu0 %vm423_vm0, %v422_v1  ;;  %356 = vmatprep.subr.mxu1 %v422_v1  ;;  %v317_v32 = vld [vmem:[#allocation2] ss:$0 sm:$0xff] }
  0x1a   :  { %357 = vmatpush3.msra.mxu1 %v132_v9  ;;  %370 = vmatpush3.msra.mxu0 %v225_v19 }
  0x1b   :  { %358 = vmatprep.subr.mxu1 %v422_v1  ;;  %371 = vmatprep.subr.mxu0 %v422_v1 }
  0x1c   :  { %359 = vmatpush3.msra.mxu1 %v131_v10  ;;  %372 = vmatpush3.msra.mxu0 %v224_v20 }
  0x1d   :  { %360 = vmatprep.subr.mxu1 %v422_v1  ;;  %373 = vmatprep.subr.mxu0 %v422_v1 }
  0x1e   :  { %361 = vmatpush3.msra.mxu1 %v130_v11  ;;  %374 = vmatpush3.msra.mxu0 %v223_v21 }
  0x1f   :  { %362 = vmatprep.subr.mxu1 %v422_v1  ;;  %375 = vmatprep.subr.mxu0 %v422_v1 }
  0x20   :  { %363 = vmatpush3.msra.mxu1 %v129_v12  ;;  %376 = vmatpush3.msra.mxu0 %v222_v22 }
  0x21   :  { %364 = vmatprep.subr.mxu1 %v422_v1  ;;  %377 = vmatprep.subr.mxu0 %v422_v1 }
  0x22   :  { %365 = vmatpush3.msra.mxu1 %v128_v13  ;;  %378 = vmatpush3.msra.mxu0 %v221_v23 }
  0x23   :  { %379 = vmatprep.subr.mxu0 %v422_v1 }
  0x24   :  { %380 = vmatpush3.msra.mxu0 %v220_v24 }
  0x25   :  { %381 = vmatprep.subr.mxu0 %v422_v1 }
  0x26   :  { %382 = vmatpush3.msra.mxu0 %v219_v25 }
  0x27   :  { %383 = vmatprep.subr.mxu0 %v422_v1 }
  0x28   :  { %384 = vmatpush3.msra.mxu0 %v218_v26 }
  0xd8   :  { %v123_v15 = vpop.f32.mrf.mxu0 }
  0xd9   :  { %v124_v16 = vadd.f32 %v313_v14, %v123_v15 }
  0xda   :  { %v349_v17 = vpop.f32.mrf.mxu0 }
  0xdb   :  { %393 = vtanh.f32 %v124_v16 }
  0xe8   :  { %v394_v18 = vpop.eup %393 }
  0xe9   :  { %367 = vmatmul.mubr.msk.f32.vlgmr.msra.gmra.mxu1 %vm143_vm2, %v394_v18 }
 0x1a9   :  { %v213_v28 = vpop.f32.mrf.mxu1 }
 0x1aa   :  { %v214_v29 = vadd.f32 %v315_v27, %v213_v28 }
 0x1ab   :  { %v368_v30 = vpop.f32.mrf.mxu1 }
 0x1ac   :  { %395 = vtanh.f32 %v214_v29 }
 0x1b9   :  { %v396_v31 = vpop.eup %395 }
 0x1ba   :  { %386 = vmatmul.mubr.msk.f32.vlgmr.msra.gmra.mxu0 %vm143_vm2, %v396_v31 }
 0x27a   :  { %v302_v33 = vpop.f32.mrf.mxu0 }
 0x27b   :  { %v303_v34 = vadd.f32 %v317_v32, %v302_v33 }
 0x27c   :  { %v387_v35 = vpop.f32.mrf.mxu0 }
 0x27d   :  { %307 = vst.msk [vmem:[%s564_s7] sm:$0xff] %vm306_vm3, %v303_v34 }
 0x27e   :  { %312 = vsyncpa [#allocation4], 1 }

</bundles_post_ra>
